<compile_context>
chip_gen: v5e
topology: v5e:2x2
jax: 0.10.0
libtpu: 0.0.40
codegen_flags: <defaults>
</compile_context>

<pallas_src>
import jax
import jax.numpy as jnp
from jax.experimental import pallas as pl
from jax.experimental.pallas import tpu as pltpu


# ----------------------------------------------------------------------------
# Kernels
# ----------------------------------------------------------------------------
def _resident_gather_kernel(idx_ref, table_ref, out_ref):
    """Table resident in VMEM: gather rows with on-chip dynamic slices."""
    i = pl.program_id(0)
    tb = out_ref.shape[0]
    base = i * tb

    @pl.loop(0, tb)
    def _gather(r):
        row = idx_ref[base + r]
        out_ref[pl.ds(r, 1), :] = table_ref[pl.ds(row, 1), :]


def _make_hbm_gather_kernel(window):
    """Table in HBM: windowed row DMAs written directly into the output block."""

    def hbm_gather_kernel(idx_ref, table_hbm, out_ref, sem_ref):
        i = pl.program_id(0)
        tb = out_ref.shape[0]
        base = i * tb

        def row_copy(r, slot):
            # HBM row -> straight into the output tile (no staging buffer).
            return pltpu.make_async_copy(
                table_hbm.at[pl.ds(idx_ref[base + r], 1), :],
                out_ref.at[pl.ds(r, 1), :],
                sem_ref.at[slot],
            )

        # Prime the window: `window` copies in flight.
        @pl.loop(0, window)
        def _prologue(r):
            row_copy(r, r % window).start()

        # Steady state: wait row r, immediately refill its slot with row r+W.
        @pl.loop(0, tb)
        def _steady(r):
            slot = r % window
            row_copy(r, slot).wait()

            @pl.when(r + window < tb)
            def _issue_next():
                row_copy(r + window, slot).start()

    return hbm_gather_kernel


# ----------------------------------------------------------------------------
# Wrapper
# ----------------------------------------------------------------------------
def _round_up(x, m):
    return ((x + m - 1) // m) * m


def _sublane_multiple(dtype):
    # 8 for 4-byte, 16 for 2-byte, 32 for 1-byte element types.
    return max(8, 32 // jnp.dtype(dtype).itemsize)


def _vmem_capacity_bytes():
    try:
        return int(pltpu.get_tpu_info().vmem_capacity_bytes)
    except Exception:
        return 64 << 20  # conservative: v7x per-TensorCore physical VMEM


def embedding_curve_forward(indices, weight_0, coeffs_t=None, *,
                            padding_idx=None, max_norm=None,
                            tokens_per_block=256, dma_window=16,
                            force_hbm_gather=False):
    """Forward of the curve Embedding: F.embedding(indices, weight_0)."""
    del coeffs_t, padding_idx  # unused by the reference forward's value path
    assert max_norm is None, "max_norm renormalization not supported"

    V, D = weight_0.shape
    itemsize = jnp.dtype(weight_0.dtype).itemsize

    # Lane-dense output: pad embedding dim to a multiple of 128.
    D_pad = _round_up(D, 128)
    table = weight_0
    if D_pad != D:
        table = jnp.pad(weight_0, ((0, 0), (0, D_pad - D)))

    flat_idx = indices.reshape(-1).astype(jnp.int32)
    # Clamp: an OOB row id would otherwise become an OOB HBM DMA (chip fault).
    flat_idx = jnp.clip(flat_idx, 0, V - 1)
    M = flat_idx.shape[0]

    # Tokens per grid step: big block, sublane-multiple, >=2 blocks if possible.
    sub = _sublane_multiple(weight_0.dtype)
    tb = max(sub, min(int(tokens_per_block), _round_up(M, sub)))
    tb = _round_up(tb, sub)
    if _round_up(M, tb) // tb < 2 and tb >= 2 * sub:
        tb = _round_up(max(sub, tb // 2), sub)    # give megacore two blocks
    M_pad = _round_up(M, tb)
    if M_pad != M:
        flat_idx = jnp.pad(flat_idx, (0, M_pad - M))   # pad with row 0 (valid)
    grid = (M_pad // tb,)

    # VMEM budgeting / path dispatch.
    out_block_bytes = tb * D_pad * itemsize
    table_bytes = V * D_pad * itemsize
    vmem_cap = _vmem_capacity_bytes()
    headroom = 2 << 20
    resident_need = 2 * table_bytes + 2 * out_block_bytes + headroom
    use_resident = (not force_hbm_gather) and resident_need <= int(0.8 * vmem_cap)

    if use_resident:
        need = resident_need
        kernel = _resident_gather_kernel
        in_specs = [pl.BlockSpec((V, D_pad), lambda i, idx: (0, 0))]  # resident
        scratch = []
    else:
        need = 2 * out_block_bytes + headroom
        window = max(1, min(int(dma_window), tb))
        kernel = _make_hbm_gather_kernel(window)
        in_specs = [pl.BlockSpec(memory_space=pl.ANY)]                # stays in HBM
        scratch = [pltpu.SemaphoreType.DMA((window,))]

    vmem_limit = int(min(vmem_cap, max(need, 16 << 20)))

    out = pl.pallas_call(
        kernel,
        out_shape=jax.ShapeDtypeStruct((M_pad, D_pad), weight_0.dtype),
        grid_spec=pltpu.PrefetchScalarGridSpec(
            num_scalar_prefetch=1,                     # flat_idx -> SMEM
            grid=grid,
            in_specs=in_specs,
            out_specs=pl.BlockSpec((tb, D_pad), lambda i, idx: (i, 0)),
            scratch_shapes=scratch,
        ),
        compiler_params=pltpu.CompilerParams(
            dimension_semantics=("parallel",),
            vmem_limit_bytes=vmem_limit,
        ),
    )(flat_idx, table)

    out = out[:M, :D]
    return out.reshape(*indices.shape, D)


# ----------------------------------------------------------------------------
# Demo / self-check
# ----------------------------------------------------------------------------
if __name__ == "__main__":
    # Module config (mirrors Embedding.__init__).
    num_embeddings, embedding_dim = 32, 128
    fix_points = [True, False, True]          # num_bends = 3
    num_bends = len(fix_points)
    padding_idx = 0
    batch, seq = 2, 8

    key = jax.random.PRNGKey(0)
    keys = jax.random.split(key, num_bends + 2)

    # reset_parameters(): weight_j ~ N(0, 1), padding row zeroed for every bend.
    weights = [
        jax.random.normal(keys[j], (num_embeddings, embedding_dim), jnp.float32)
        for j in range(num_bends)
    ]
    weights = [w.at[padding_idx].set(0.0) for w in weights]
    weight_0 = weights[0]

    # Quadratic Bezier coefficients at t=0.3 (passed like the module's forward
    # signature and, like the module, unused by the value path).
    t = 0.3
    coeffs_t = jnp.array([(1 - t) ** 2, 2 * t * (1 - t), t ** 2], jnp.float32)

    # --- Test 1: default dispatch (small table -> VMEM-resident fast path). ---
    indices = jax.random.randint(keys[num_bends], (batch, seq), 0,
                                 num_embeddings, dtype=jnp.int32)
    indices = indices.at[0, 0].set(padding_idx)   # exercise the zeroed row
    out = embedding_curve_forward(indices, weight_0, coeffs_t,
                                  padding_idx=padding_idx)
    out = jax.block_until_ready(out)
    ref = weight_0[indices]
    assert out.shape == ref.shape == (batch, seq, embedding_dim)
    assert jnp.array_equal(out, ref)
    assert bool(jnp.all(out[0, 0] == 0.0))        # padding_idx row is zero

    # --- Test 2: forced HBM windowed-DMA gather path (large-vocab fallback). ---
    indices2 = jax.random.randint(keys[num_bends + 1], (4, 40), 0,
                                  num_embeddings, dtype=jnp.int32)
    out2 = embedding_curve_forward(indices2, weight_0, coeffs_t,
                                   padding_idx=padding_idx,
                                   force_hbm_gather=True,
                                   tokens_per_block=32, dma_window=8)
    out2 = jax.block_until_ready(out2)
    ref2 = weight_0[indices2]
    assert out2.shape == ref2.shape == (4, 40, embedding_dim)
    assert jnp.array_equal(out2, ref2)

    print("KERNEL_OK")
</pallas_src>

<mosaic_0001>
module attributes {stable_mosaic.version = 11 : i64} {
  func.func @_resident_gather_kernel(%arg0: i32, %arg1: memref<16xi32, #tpu.memory_space<smem>>, %arg2: memref<32x128xf32, #tpu.memory_space<vmem>>, %arg3: memref<8x128xf32, #tpu.memory_space<vmem>>) attributes {dimension_semantics = [#tpu.dimension_semantics<parallel>], iteration_bounds = array<i64: 2>, scalar_prefetch = 1 : i64, scratch_operands = 0 : i64, tpu.core_type = #tpu.core_type<tc>, window_params = [{pipeline_mode = #tpu.pipeline_mode<synchronous>, transform_indices = @transform_0, window_bounds = array<i64: 32, 128>}, {transform_indices = @transform_1, window_bounds = array<i64: 8, 128>}]} {
    %c8_i32 = arith.constant 8 : i32
    %0 = arith.muli %arg0, %c8_i32 : i32
    %c0_i32 = arith.constant 0 : i32
    %c8_i32_0 = arith.constant 8 : i32
    %1 = arith.addi %c0_i32, %c8_i32_0 : i32
    %c1_i32 = arith.constant 1 : i32
    scf.for %arg4 = %c0_i32 to %1 step %c1_i32  : i32 {
      %c1_i32_2 = arith.constant 1 : i32
      %2 = arith.muli %arg4, %c1_i32_2 : i32
      %c0_i32_3 = arith.constant 0 : i32
      %3 = arith.addi %c0_i32_3, %2 : i32
      %4 = arith.addi %0, %3 : i32
      %5 = arith.index_cast %4 : i32 to index
      %6 = memref.load %arg1[%5] : memref<16xi32, #tpu.memory_space<smem>>
      %7 = arith.index_cast %6 : i32 to index
      %c0 = arith.constant 0 : index
      %8 = vector.load %arg2[%7, %c0] : memref<32x128xf32, #tpu.memory_space<vmem>>, vector<1x128xf32>
      %9 = arith.index_cast %3 : i32 to index
      %c0_4 = arith.constant 0 : index
      %10 = vector.load %arg3[%9, %c0_4] : memref<8x128xf32, #tpu.memory_space<vmem>>, vector<1x128xf32>
      tpu.vector_store %arg3[%9, %c0_4], %8 {strides = array<i32>} : memref<8x128xf32, #tpu.memory_space<vmem>>, vector<1x128xf32>,
    }
    %c8_i32_1 = arith.constant 8 : i32
    return
  }
  func.func @transform_0(%arg0: i32, %arg1: memref<16xi32, #tpu.memory_space<smem>>) -> (i32, i32) {
    %c0_i32 = arith.constant 0 : i32
    %c0_i32_0 = arith.constant 0 : i32
    %c0_i32_1 = arith.constant 0 : i32
    return %c0_i32, %c0_i32_0 : i32, i32
  }
  func.func @transform_1(%arg0: i32, %arg1: memref<16xi32, #tpu.memory_space<smem>>) -> (i32, i32) {
    %c0_i32 = arith.constant 0 : i32
    %c0_i32_0 = arith.constant 0 : i32
    return %arg0, %c0_i32 : i32, i32
  }
}

</mosaic_0001>

<bundles_post_ra>
// kernel: tpu_custom_call.1
= control target key start
LH: loop header
LB: loop body
LE: loop exit
PB: predicated region body
PF: predicated region fallthrough
CT: control target
= control target key end

     0   :  { %s408_s12 = smov [#allocation3]   ;;  %s520_s0 = inlined_call_operand.hbm [shape: s32[16], index: 0, kind: input, shape index: {}]   ;;  %s521_s1 = inlined_call_operand.hbm [shape: f32[32,128], index: 1, kind: input, shape index: {}]   ;;  %s522_s2 = inlined_call_operand.hbm [shape: f32[16,128], index: 2, kind: output, shape index: {}]  }
   0x1   :  { %s8_s11 = sshll.u32 %s520_s0, 4  ;;  %s9_s11 = int_to_ptr.hbm [resolvable:$true] %s8_s11 }
   0x2   :  { %11 = dma.hbm_to_smem %s9_s11, 16, %s408_s12, [#allocation2] }
   0x3   :  { %378 = dma.done.wait [#allocation2], 16 }
   0x4   :  { %379 = vsyncadd [#allocation2], 4294967280 }
   0x5   :  { %14 = sfence }
   0x6   :  { %15 = vsyncpa [#allocation5], 0 }
   0x7   :  { %16 = vsyncpa [#allocation6], 0 }
   0x8   :  { %18 = vsyncpa [#allocation6 + $0x1], 0  ;;  %s430_s13 = smov 0   ;;  %s432_s14 = smov 0  }
   0x9   :  { %s434_s15 = smov 0   ;;  %s436_s16 = smov 0  }
   0xa LB: > { %s451_s0 = sadd.s32 4294967295, %s402_s16   ;;  %s216_s17 = sadd.s32 4294967294, %s402_s16   ;;  %s402_s16 = sphi %s436_s16, %s528_s16   ;;  %s398_s15 = sphi %s434_s15, %s527_s15   ;;  %s394_s14 = sphi %s432_s14, %s526_s14   ;;  %s390_s13 = sphi %s430_s13, %s525_s13  }
   0xb   : > { %s455_s18 = sadd.s32 1, %s402_s16   ;;  %s52_s19 = sadd.s32 1, %s398_s15 }
   0xc   : > { %s49_s20 = ssub.s32 %s402_s16, %s455_s18  ;;  %p62_p0 = scmp.ne.s32.totalorder %s398_s15, %s394_s14 }
   0xd   : > { %p50_p1 = scmp.eq.s32.totalorder %s49_s20, 0  ;;  %p63_p2 = scmp.eq.s32.totalorder %s451_s0, 1 }
   0xe   : > { %p68_p3 = scmp.ne.s32.totalorder %s394_s14, %s390_s13  ;;  %p69_p4 = scmp.eq.s32.totalorder %s216_s17, 1 }
   0xf   : > { %s466_s21 = scalar_select %p50_p1, %s398_s15, %s52_s19  }
  0x10   : > { %p468_p5 = por %p63_p2, %p62_p0  ;;  %p472_p6 = por %p69_p4, %p68_p3 }
  0x11   : > { %p217_p7 = scmp.ge.s32.totalorder %s402_s16, 1  ;;  %p76_p8 = scmp.lt.s32.totalorder %s402_s16, 3 }
  0x12   : > { %p241_p9 = scmp.eq.s32.totalorder %s451_s0, 0  ;;  %s87_s26 = sshll.u32 %s521_s1, 4  ;;  %s88_s26 = int_to_ptr.hbm [resolvable:$true] %s87_s26 }
  0x13   : > { %p77_p10 = pnand %p217_p7, %p76_p8  ;;  %s409_s27 = smov [#allocation4]  }
  0x14   : > { %s89_s28 = sshll.u32 %s409_s27, 4  ;;  %s410_s29 = smov 128   ;;  %s90_s28 = int_to_ptr.vmem [resolvable:$true] %s89_s28 }
  0x15   : > { %p233_p11 = pneg %p77_p10  ;;  %s411_s30 = smov 8  }
  0x16   : > { %105 = sbr.rel (%p77_p10) target bundleno = 48 (0x30), region = 24 }
  0x17   : > { %p234_p12 = pnand %p241_p9, %p233_p11 }
  0x19   : > { %236 = dma.hbm_to_vmem [thread:$0]  (!%p234_p12), %s88_s26, 512, %s90_s28, [#allocation5], %s410_s29, %s410_s29, %s411_s30  }
  0x1b   : > { %381 = dma.done.wait (%p241_p9), [#allocation5], 512  }
  0x1c   : > { %383 = vsyncadd (%p241_p9), [#allocation5], 4294966784  ;;  %s118_s3 = sand.u32 1, %s394_s14   ;;  %s222_s4 = sshll.u32 %s451_s0, 3 }
  0x1d   : > { %s221_s5 = sshll.u32 %s118_s3, 3  ;;  %s404_s7 = smov 0  }
  0x1e   : > { %s120_s6 = scalar_lea.vmem [#allocation7], %s221_s5 }
  0x1f LB: >> { %s128_s8 = sadd.s32 %s406_s7, %s222_s4  ;;  %s132_s10 = scalar_lea.vmem %s120_s6, %s406_s7 [#allocation7]  ;;  %s406_s7 = sphi %s404_s7, %s127_s7  }
  0x20   : >> { %s129_s9 = sld [smem:[#allocation3 + %s128_s8]]  ;;  %s127_s7 = sadd.s32 1, %s406_s7  }
  0x21   : >> { %p124_p13 = scmp.ge.s32.totalorder %s127_s7, 8  }
  0x22   : > { %s145_s0 = scalar_lea.hbm (%p124_p13), %s522_s2, %s222_s4  ;;  %s147_s19 = sshll.u32 (%p124_p13), %s120_s6, 4  ;;  %s148_s19 = int_to_ptr.vmem [resolvable:$true] %s147_s19 }
  0x23   : > { %s149_s20 = sshll.u32 (%p124_p13), %s145_s0, 4  ;;  %s135_s24 = scalar_lea.sflag (%p124_p13), [#allocation6], %s118_s3  ;;  %s150_s20 = int_to_ptr.hbm [resolvable:$true] %s149_s20 }
  0x24   : > { %126 = sbr.rel (!%p124_p13) target bundleno = 31 (0x1f), region = 70  ;;  %s344_s25 = sshra.s32 (%p124_p13), %s150_s20, 4  ;;  %s345_s25 = int_to_ptr.hbm [resolvable:$true] %s344_s25 }
  0x25   : > { %s346_s26 = scalar_lea.hbm (%p124_p13), %s345_s25, 8  ;;  %s350_s29 = scalar_lea.hbm (%p124_p13), %s522_s2, 16 }
  0x26   : >> { %s130_s11 = scalar_lea.vmem [#allocation4], %s129_s9  ;;  %p347_p0 = scmp.ne.s32.totalorder (%p124_p13), %s345_s25, %s346_s26 }
  0x27   : >> { %v131_v0 = vld [vmem:[%s130_s11] sm:$0x1]  ;;  %p351_p3 = scmp.lt.s32.totalorder (%p124_p13), %s345_s25, %s522_s2  ;;  %p352_p4 = scmp.lt.s32.totalorder (%p124_p13), %s350_s29, %s346_s26 }
  0x28   : >> { %133 = vst [vmem:[%s132_s10] sm:$0x1] %v131_v0  ;;  %p348_p1 = pnand (%p124_p13), %p347_p0, %p468_p5 }
  0x29   : > { %p353_p7 = por %p352_p4, %p351_p3 }
  0x2a   : > { %p349_p2 = pneg %p348_p1 }
  0x2c   : > { %p354_p8 = pnand %p353_p7, %p349_p2 }
  0x2e   : > { %357 = shalt.err (!%p354_p8)
}
  0x2f   : > { %231 = dma.vmem_to_hbm [thread:$0]  (%p468_p5), %s148_s19, 128, %s150_s20, %s135_s24  }
  0x30 PF: > { %p243_p9 = scmp.ge.s32.totalorder %s402_s16, 2  ;;  %s161_s3 = sand.u32 1, %s390_s13  }
  0x31   : > { %s162_s4 = scalar_lea.sflag [#allocation6], %s161_s3 }
  0x32   : > { %p238_p10 = pnand %p243_p9, %p472_p6 }
  0x34   : > { %p239_p11 = pneg %p238_p10 }
  0x36   : > { %385 = dma.done.wait (%p239_p11), %s162_s4, 128  }
  0x37   : > { %387 = vsyncadd (%p239_p11), %s162_s4, 4294967168  ;;  %p21_p12 = scmp.ge.s32.totalorder %s455_s18, 4   ;;  %s525_s13 = smov %s394_s14 }
  0x38   : > { %s526_s14 = smov %s398_s15  ;;  %s527_s15 = smov %s466_s21 }
  0x39   : > { %s528_s16 = smov %s455_s18  ;;  %23 = sbr.rel (!%p21_p12) target bundleno = 10 (0xa), region = 81 }
  0x3e   :  { %168 = vsyncpa [#allocation5], 1 }
  0x3f   :  { %170 = vsyncpa [#allocation5 + $0x1], 1 }
  0x40   :  { %171 = vsyncpa [#allocation6], 1 }
  0x41   :  { %173 = vsyncpa [#allocation6 + $0x1], 1 }

</bundles_post_ra>
